<compile_context>
chip_gen: v7x
topology: tpu7x:2x2x1
jax: 0.10.0
libtpu: 0.0.40
codegen_flags: <defaults>
</compile_context>

<pallas_src>
import jax
import jax.numpy as jnp
from jax.experimental import pallas as pl
from jax.experimental.pallas import tpu as pltpu


def _pos_embed_alias_kernel(pos_hbm_ref, out_hbm_ref):
    # Output is aliased to the input (input_output_aliases={0: 0}); the table is
    # already in place, so there is nothing for the TensorCore to do.
    del pos_hbm_ref, out_hbm_ref


def _pos_embed_copy_kernel(pos_hbm_ref, out_hbm_ref, sem):
    # Single HBM->HBM DMA of the whole (1, L, D) table.  The DMA engine moves the
    # bytes; the TensorCore only issues the descriptor and waits.
    cp = pltpu.make_async_copy(pos_hbm_ref, out_hbm_ref, sem)
    cp.start()
    cp.wait()


def positional_embedding_learnable(x, pos_table, *, materialize=False):
    """Mirror of PositionalEmbeddingLearnable.forward.

    `x` is accepted only to mirror the PyTorch signature; the reference forward
    ignores it entirely and returns the (1, input_length, embedding_dim) table.

    materialize=False (default): no-op kernel, output aliased to pos_table.
    materialize=True: force a fresh output buffer via one HBM->HBM DMA.
    """
    del x  # ignored by the reference implementation

    out_shape = jax.ShapeDtypeStruct(pos_table.shape, pos_table.dtype)

    if materialize:
        return pl.pallas_call(
            _pos_embed_copy_kernel,
            out_shape=out_shape,
            in_specs=[pl.BlockSpec(memory_space=pl.ANY)],   # raw HBM ref, no auto-DMA
            out_specs=pl.BlockSpec(memory_space=pl.ANY),    # raw HBM ref, DMA target
            scratch_shapes=[pltpu.SemaphoreType.DMA(())],
        )(pos_table)

    return pl.pallas_call(
        _pos_embed_alias_kernel,
        out_shape=out_shape,
        in_specs=[pl.BlockSpec(memory_space=pl.ANY)],
        out_specs=pl.BlockSpec(memory_space=pl.ANY),
        input_output_aliases={0: 0},                        # output IS the input table
    )(pos_table)


if __name__ == "__main__":
    # Small shapes consistent with the module: seq (input_length)=8, hidden=32.
    input_length = 8
    embedding_dim = 32
    batch = 2

    key = jax.random.PRNGKey(0)
    k_x, k_pos = jax.random.split(key)

    # x is only passed through the signature; the forward ignores it.
    x = jax.random.normal(k_x, (batch, input_length, embedding_dim), dtype=jnp.float32)

    # Deterministic stand-in for torch.randn(1, input_length, embedding_dim),
    # treated as the learnable parameter created once at module init.
    pos_table = jax.random.normal(
        k_pos, (1, input_length, embedding_dim), dtype=jnp.float32
    )

    # Default (aliased, zero-copy-from-kernel) path.
    out = positional_embedding_learnable(x, pos_table)
    out = jax.block_until_ready(out)
    assert out.shape == (1, input_length, embedding_dim)
    assert jnp.array_equal(out, pos_table)

    # Explicit fresh-buffer path (single HBM->HBM DMA).
    out_copy = positional_embedding_learnable(x, pos_table, materialize=True)
    out_copy = jax.block_until_ready(out_copy)
    assert out_copy.shape == (1, input_length, embedding_dim)
    assert jnp.array_equal(out_copy, pos_table)

    print("KERNEL_OK")
</pallas_src>

<mosaic_0001>
module attributes {stable_mosaic.version = 11 : i64} {
  func.func @_pos_embed_alias_kernel(%arg0: memref<1x8x32xf32, #tpu.memory_space<any>>, %arg1: memref<1x8x32xf32, #tpu.memory_space<any>>) attributes {dimension_semantics = [], scalar_prefetch = 0 : i64, scratch_operands = 0 : i64, tpu.core_type = #tpu.core_type<tc>} {
    return
  }
}

</mosaic_0001>

<bundles_post_ra>
// kernel: tpu_custom_call.1
= control target key start
LH: loop header
LB: loop body
LE: loop exit
PB: predicated region body
PF: predicated region fallthrough
CT: control target
= control target key end

     0   :  { %s16_s0 = inlined_call_operand.hbm [shape: f32[1,8,32], index: 0, kind: input, shape index: {}, may-alias: {0,1}]   ;;  %s17_s1 = inlined_call_operand.hbm [shape: f32[1,8,32], index: 1, kind: output, shape index: {}, may-alias: {0,1}]  }

</bundles_post_ra>
